<compile_context>
chip_gen: v7x
topology: tpu7x:2x2x1
jax: 0.10.0
libtpu: 0.0.40
codegen_flags: <defaults>
</compile_context>

<pallas_src>
import functools

import numpy as np

import jax
import jax.numpy as jnp
from jax.experimental import pallas as pl
from jax.experimental.pallas import tpu as pltpu


_MAX_TILE_COLS = 131072  # sanity cap on a single tile's lane extent


def _vmem_budgets():
    """Return (vmem_limit_bytes, tile_budget_bytes), generation aware."""
    cap = None
    try:
        info = pltpu.get_tpu_info()
        cap = int(getattr(info, "vmem_capacity_bytes", 0)) or None
    except Exception:
        cap = None
    if cap is None:
        cap = 64 << 20                       # conservative: v7x physical VMEM
    # 3/4 of physical, capped at 96 MiB (v5e/v6e) and floored at 32 MiB.
    limit = max(32 << 20, min((cap * 3) // 4, 96 << 20))
    tile_budget = limit // 2                 # double-buffered inputs live here
    return limit, tile_budget


def _choose_tile(hw, c, itemsize, tile_budget_bytes, requested=None):
    """Pick the column tile: as big as the VMEM budget allows."""
    packing = max(1, 4 // itemsize)                  # f32->1, bf16->2, int8->4
    sub = 8 * packing                                # sublane multiple
    padded_c = -(-c // sub) * sub
    # double-buffered logits tile + double-buffered sublane-padded target row
    bytes_per_col = 2 * padded_c * itemsize + 2 * 32
    max_t = (tile_budget_bytes // bytes_per_col) // 128 * 128
    max_t = max(128, min(max_t, _MAX_TILE_COLS))
    t = max_t if requested is None else max(128, min(int(requested), max_t))
    if hw <= t:
        return hw, 1, False                  # single full-width tile, no mask
    t = (t // 128) * 128                     # lane-aligned interior tiles
    n_tiles = -(-hw // t)
    return t, n_tiles, (hw % t != 0)


def _focal_factor(one_minus_pt, gamma):
    """(1 - pt) ** gamma, specialized on the static gamma."""
    g = float(gamma)
    if g == 0.0:
        return None                          # weight == 1
    if g.is_integer() and 1.0 <= g <= 8.0:
        w = one_minus_pt
        for _ in range(int(g) - 1):          # repeated VPU multiply, no EUP pow
            w = w * one_minus_pt
        return w
    return jnp.power(one_minus_pt, g)        # non-integer gamma fallback


def _focal_loss_kernel(x_ref, t_ref, out_ref, *, gamma, alpha, hw, tile,
                       mask_tail):
    """One lane-dense (C, T) column tile of one sample.

    x_ref:   (1, C, T) logits (original dtype, cast to f32 in VMEM)
    t_ref:   (1, 1, T) int8/int32 targets
    out_ref: (1, 1, 1, 128) f32 — this (sample, tile)'s scalar partial sum,
             broadcast across the 128 lanes.  Independent per grid point, so
             both grid axes are "parallel".
    """
    x = x_ref[0].astype(jnp.float32)                      # (C, T)
    c, t = x.shape

    # log-softmax over the class (sublane) axis
    m = jnp.max(x, axis=0, keepdims=True)                 # (1, T)
    z = x - m
    e = jnp.exp(z)                                        # (C, T), reused below
    se = jnp.sum(e, axis=0, keepdims=True)                # (1, T)
    lse = jnp.log(se)

    tgt = t_ref[0].astype(jnp.int32)                      # (1, T)
    cls = jax.lax.broadcasted_iota(jnp.int32, (c, t), 0)  # class id per row
    onehot = (cls == tgt).astype(jnp.float32)             # (C, T)

    z_t = jnp.sum(z * onehot, axis=0, keepdims=True)      # z at target class
    logpt = z_t - lse                                     # (1, T)

    if alpha is not None:
        if len(alpha) <= 8:
            # short splat-constant where-chain
            at = jnp.zeros_like(logpt)
            for k, a_k in enumerate(alpha):
                at = jnp.where(tgt == k, jnp.float32(a_k), at)
        else:
            # larger C: reuse the onehot, one sublane reduction
            a_col = jnp.asarray(alpha, dtype=jnp.float32).reshape(c, 1)
            at = jnp.sum(onehot * a_col, axis=0, keepdims=True)
        logpt = logpt * at

    if float(gamma) == 0.0:
        loss = -logpt                                     # pt never needed
    else:
        # Reuse exp(z): pt = e_t / se via approx reciprocal + one Newton step
        # (drops the 2nd exp per column; refinement is cheap VPU work).
        e_t = jnp.sum(e * onehot, axis=0, keepdims=True)
        r = pl.reciprocal(se, approx=True)
        r = r * (2.0 - se * r)                            # Newton refinement
        pt = e_t * r
        w = _focal_factor(jnp.maximum(1.0 - pt, 0.0), gamma)
        loss = -(w * logpt)                               # (1, T)

    def write(v):
        # cross-lane reduce (XLU slot, otherwise idle), broadcast to 128 lanes
        out_ref[...] = jnp.zeros(out_ref.shape, jnp.float32) + jnp.sum(v)

    if mask_tail:
        j = pl.program_id(1)
        last = pl.num_programs(1) - 1

        @pl.when(j != last)
        def _():
            write(loss)

        @pl.when(j == last)
        def _():
            # Ragged last tile: columns >= HW hold unspecified data.  Mask
            # BEFORE the cross-column reduce; where() selects a literal 0.0 so
            # NaN/Inf garbage cannot leak into the sum.
            col = j * tile + jax.lax.broadcasted_iota(jnp.int32, (1, t), 1)
            write(jnp.where(col < hw, loss, 0.0))
    else:
        write(loss)


def focal_loss(logits, target, *, gamma=0.0, alpha=None, size_average=True,
               tile_cols=None):
    """Pallas implementation of FocalLoss.forward.

    logits: (N, C, H, W) / (N, C, L) float logits, or already (M, C) 2-D
    target: matching integer class ids ((N, H, W) / (N, L) / (M,))
    tile_cols: optional column-tile override; default grows toward the VMEM
      budget (biggest tile that fits).
    """
    x = jnp.asarray(logits)                # original dtype (bf16 stays bf16)
    if x.ndim > 2:
        n, c = x.shape[0], x.shape[1]
        x = x.reshape(n, c, -1)            # (N, C, HW): contiguous, no transpose
    else:
        # NOTE (review): this 2-D path DOES materialize a full HBM transpose
        # (read + write of all logits) before the kernel.  If the producer can
        # emit a (C, M) layout, pass logits.T to avoid ~2x HBM traffic.
        m_rows, c = x.shape
        x = x.T.reshape(1, c, m_rows)
        n = 1
    hw = x.shape[2]

    # int8 target stream when class ids fit (C <= 127): 1/4 the HBM read bytes
    tgt_dtype = jnp.int8 if c <= 127 else jnp.int32
    tgt = jnp.asarray(target).reshape(n, 1, hw).astype(tgt_dtype)

    # static alpha handling (baked into the kernel, no extra input stream)
    if alpha is None:
        alpha_t = None
    elif isinstance(alpha, (float, int)):
        if c != 2:
            raise ValueError("scalar alpha builds a length-2 table; requires "
                             "C == 2 (intentional, stricter than the PyTorch "
                             "module's silent gather semantics)")
        alpha_t = (float(alpha), 1.0 - float(alpha))
    else:
        alpha_t = tuple(float(a) for a in np.asarray(alpha).reshape(-1))
        if len(alpha_t) != c:
            raise ValueError("per-class alpha must have length C")

    vmem_limit, tile_budget = _vmem_budgets()
    tile, n_tiles, mask_tail = _choose_tile(hw, c, x.dtype.itemsize,
                                            tile_budget, tile_cols)

    kernel = functools.partial(_focal_loss_kernel, gamma=float(gamma),
                               alpha=alpha_t, hw=hw, tile=tile,
                               mask_tail=mask_tail)

    # Pipeline depth stays at the default double buffer: VMEM is spent on a
    # bigger tile first (a 3rd buffer costs the same VMEM as a 50% larger tile).
    partials = pl.pallas_call(
        kernel,
        out_shape=jax.ShapeDtypeStruct((n, n_tiles, 1, 128), jnp.float32),
        grid_spec=pltpu.PrefetchScalarGridSpec(
            num_scalar_prefetch=0,
            grid=(n, n_tiles),
            in_specs=[
                pl.BlockSpec((1, c, tile), lambda i, j: (i, 0, j)),   # logits
                pl.BlockSpec((1, 1, tile), lambda i, j: (i, 0, j)),   # targets
            ],
            out_specs=pl.BlockSpec((1, 1, 1, 128), lambda i, j: (i, j, 0, 0)),
        ),
        compiler_params=pltpu.CompilerParams(
            # independent output block per (sample, column-tile) => both axes
            # parallel (second TensorCore on v7x is used even when N == 1).
            dimension_semantics=("parallel", "parallel"),
            vmem_limit_bytes=vmem_limit,
        ),
    )(x, tgt)

    total = jnp.sum(partials[:, :, 0, 0])   # tiny (n, n_tiles) reduce in XLA
    if size_average:
        return total / jnp.float32(n * hw)
    return total


def _reference_focal_loss(logits, target, gamma, alpha_vec, size_average):
    x = jnp.asarray(logits, jnp.float32)
    if x.ndim > 2:
        n, c = x.shape[0], x.shape[1]
        x = x.reshape(n, c, -1).transpose(0, 2, 1).reshape(-1, c)
    t = jnp.asarray(target, jnp.int32).reshape(-1)
    logp = jax.nn.log_softmax(x, axis=1)
    logpt = jnp.take_along_axis(logp, t[:, None], axis=1)[:, 0]
    pt = jnp.exp(logpt)
    if alpha_vec is None:
        at = 1.0
    else:
        at = jnp.asarray(alpha_vec, jnp.float32)[t]
    loss = -1.0 * (1.0 - pt) ** gamma * (logpt * at)
    return loss.mean() if size_average else loss.sum()


if __name__ == "__main__":
    key = jax.random.PRNGKey(0)
    k1, k2, k3, k4 = jax.random.split(key, 4)

    # --- test 1: NCHW, per-class alpha, gamma = 2 (integer fast path), mean ---
    N, C, H, W = 2, 4, 16, 16
    logits = jax.random.normal(k1, (N, C, H, W), jnp.float32)
    target = jax.random.randint(k2, (N, H, W), 0, C, jnp.int32)
    gamma = 2.0
    alpha = [0.25, 0.75, 0.5, 0.5]
    out = focal_loss(logits, target, gamma=gamma, alpha=alpha,
                     size_average=True)
    out = jax.block_until_ready(out)
    ref = _reference_focal_loss(logits, target, gamma, alpha,
                                size_average=True)
    assert jnp.allclose(out, ref, rtol=5e-4, atol=5e-5), (out, ref)

    # --- test 2: gamma = 0, no alpha, sum (exact path, no reciprocal) ---
    out2 = focal_loss(logits, target, gamma=0.0, alpha=None,
                      size_average=False)
    out2 = jax.block_until_ready(out2)
    ref2 = _reference_focal_loss(logits, target, 0.0, None,
                                 size_average=False)
    assert jnp.allclose(out2, ref2, rtol=2e-5, atol=1e-5), (out2, ref2)

    # --- test 3: multi-tile ragged tail (forced small tile), gamma = 3 ---
    N3, C3, L3 = 1, 5, 333
    logits3 = jax.random.normal(k3, (N3, C3, L3), jnp.float32)
    target3 = jax.random.randint(k4, (N3, L3), 0, C3, jnp.int32)
    out3 = focal_loss(logits3, target3, gamma=3.0, alpha=None,
                      size_average=True, tile_cols=128)
    out3 = jax.block_until_ready(out3)
    ref3 = _reference_focal_loss(logits3, target3, 3.0, None,
                                 size_average=True)
    assert jnp.allclose(out3, ref3, rtol=5e-4, atol=5e-5), (out3, ref3)

    print("KERNEL_OK")
</pallas_src>

<mosaic_0001>
module attributes {stable_mosaic.version = 11 : i64} {
  func.func @_focal_loss_kernel(%arg0: i32, %arg1: i32, %arg2: memref<1x4x256xf32, #tpu.memory_space<vmem>>, %arg3: memref<1x1x256xi8, #tpu.memory_space<vmem>>, %arg4: memref<1x1x1x128xf32, #tpu.memory_space<vmem>>) attributes {dimension_semantics = [#tpu.dimension_semantics<parallel>, #tpu.dimension_semantics<parallel>], iteration_bounds = array<i64: 2, 1>, scalar_prefetch = 0 : i64, scratch_operands = 0 : i64, tpu.core_type = #tpu.core_type<tc>, window_params = [{transform_indices = @transform_0, window_bounds = array<i64: 1, 4, 256>}, {transform_indices = @transform_1, window_bounds = array<i64: 1, 1, 256>}, {transform_indices = @transform_2, window_bounds = array<i64: 1, 1, 1, 128>}]} {
    %c0 = arith.constant 0 : index
    %c0_0 = arith.constant 0 : index
    %c0_1 = arith.constant 0 : index
    %0 = vector.load %arg2[%c0, %c0_0, %c0_1] : memref<1x4x256xf32, #tpu.memory_space<vmem>>, vector<1x4x256xf32>
    %1 = vector.shape_cast %0 : vector<1x4x256xf32> to vector<4x256xf32>
    %cst = arith.constant dense<0xFF800000> : vector<256xf32>
    %2 = vector.multi_reduction <maximumf>, %1, %cst [0] : vector<4x256xf32> to vector<256xf32>
    %3 = vector.shape_cast %2 : vector<256xf32> to vector<1x256xf32>
    %4 = vector.broadcast %3 : vector<1x256xf32> to vector<4x256xf32>
    %5 = arith.subf %1, %4 : vector<4x256xf32>
    %6 = math.exp %5 : vector<4x256xf32>
    %cst_2 = arith.constant dense<0.000000e+00> : vector<256xf32>
    %7 = vector.multi_reduction <add>, %6, %cst_2 [0] : vector<4x256xf32> to vector<256xf32>
    %8 = vector.shape_cast %7 : vector<256xf32> to vector<1x256xf32>
    %9 = math.log %8 : vector<1x256xf32>
    %c0_3 = arith.constant 0 : index
    %c0_4 = arith.constant 0 : index
    %c0_5 = arith.constant 0 : index
    %10 = vector.load %arg3[%c0_3, %c0_4, %c0_5] : memref<1x1x256xi8, #tpu.memory_space<vmem>>, vector<1x1x256xi8>
    %11 = vector.shape_cast %10 : vector<1x1x256xi8> to vector<1x256xi8>
    %12 = arith.extsi %11 : vector<1x256xi8> to vector<1x256xi32>
    %13 = tpu.iota {dimensions = array<i32: 0>} : vector<4x256xi32>
    %14 = vector.broadcast %12 : vector<1x256xi32> to vector<4x256xi32>
    %15 = arith.cmpi eq, %13, %14 : vector<4x256xi32>
    %16 = arith.extui %15 : vector<4x256xi1> to vector<4x256xi32>
    %17 = arith.sitofp %16 : vector<4x256xi32> to vector<4x256xf32>
    %18 = arith.mulf %5, %17 : vector<4x256xf32>
    %cst_6 = arith.constant dense<0.000000e+00> : vector<256xf32>
    %19 = vector.multi_reduction <add>, %18, %cst_6 [0] : vector<4x256xf32> to vector<256xf32>
    %20 = vector.shape_cast %19 : vector<256xf32> to vector<1x256xf32>
    %21 = arith.subf %20, %9 : vector<1x256xf32>
    %cst_7 = arith.constant 0.000000e+00 : f32
    %22 = vector.broadcast %cst_7 : f32 to vector<1x256xf32>
    %c0_i32 = arith.constant 0 : i32
    %23 = vector.broadcast %c0_i32 : i32 to vector<1x256xi32>
    %24 = arith.cmpi eq, %12, %23 : vector<1x256xi32>
    %cst_8 = arith.constant 2.500000e-01 : f32
    %25 = vector.broadcast %cst_8 : f32 to vector<1x256xf32>
    %26 = arith.select %24, %25, %22 : vector<1x256xi1>, vector<1x256xf32>
    %c1_i32 = arith.constant 1 : i32
    %27 = vector.broadcast %c1_i32 : i32 to vector<1x256xi32>
    %28 = arith.cmpi eq, %12, %27 : vector<1x256xi32>
    %cst_9 = arith.constant 7.500000e-01 : f32
    %29 = vector.broadcast %cst_9 : f32 to vector<1x256xf32>
    %30 = arith.select %28, %29, %26 : vector<1x256xi1>, vector<1x256xf32>
    %c2_i32 = arith.constant 2 : i32
    %31 = vector.broadcast %c2_i32 : i32 to vector<1x256xi32>
    %32 = arith.cmpi eq, %12, %31 : vector<1x256xi32>
    %cst_10 = arith.constant 5.000000e-01 : f32
    %33 = vector.broadcast %cst_10 : f32 to vector<1x256xf32>
    %34 = arith.select %32, %33, %30 : vector<1x256xi1>, vector<1x256xf32>
    %c3_i32 = arith.constant 3 : i32
    %35 = vector.broadcast %c3_i32 : i32 to vector<1x256xi32>
    %36 = arith.cmpi eq, %12, %35 : vector<1x256xi32>
    %cst_11 = arith.constant 5.000000e-01 : f32
    %37 = vector.broadcast %cst_11 : f32 to vector<1x256xf32>
    %38 = arith.select %36, %37, %34 : vector<1x256xi1>, vector<1x256xf32>
    %39 = arith.mulf %21, %38 : vector<1x256xf32>
    %40 = arith.mulf %6, %17 : vector<4x256xf32>
    %cst_12 = arith.constant dense<0.000000e+00> : vector<256xf32>
    %41 = vector.multi_reduction <add>, %40, %cst_12 [0] : vector<4x256xf32> to vector<256xf32>
    %42 = vector.shape_cast %41 : vector<256xf32> to vector<1x256xf32>
    %43 = tpu.reciprocal %8 {approx = true} : vector<1x256xf32> -> vector<1x256xf32>
    %44 = arith.mulf %8, %43 : vector<1x256xf32>
    %cst_13 = arith.constant 2.000000e+00 : f32
    %45 = vector.broadcast %cst_13 : f32 to vector<1x256xf32>
    %46 = arith.subf %45, %44 : vector<1x256xf32>
    %47 = arith.mulf %43, %46 : vector<1x256xf32>
    %48 = arith.mulf %42, %47 : vector<1x256xf32>
    %cst_14 = arith.constant 1.000000e+00 : f32
    %49 = vector.broadcast %cst_14 : f32 to vector<1x256xf32>
    %50 = arith.subf %49, %48 : vector<1x256xf32>
    %cst_15 = arith.constant 0.000000e+00 : f32
    %51 = vector.broadcast %cst_15 : f32 to vector<1x256xf32>
    %52 = arith.maximumf %50, %51 : vector<1x256xf32>
    %53 = arith.mulf %52, %52 : vector<1x256xf32>
    %54 = arith.mulf %53, %39 : vector<1x256xf32>
    %cst_16 = arith.constant 0.000000e+00 : f32
    %55 = vector.broadcast %cst_16 : f32 to vector<1x256xf32>
    %56 = arith.subf %55, %54 : vector<1x256xf32>
    %cst_17 = arith.constant 0.000000e+00 : f32
    %57 = vector.broadcast %cst_17 : f32 to vector<1x1x1x128xf32>
    %58 = vector.shape_cast %56 : vector<1x256xf32> to vector<1x1x256xf32>
    %cst_18 = arith.constant dense<0.000000e+00> : vector<1xf32>
    %59 = vector.multi_reduction <add>, %58, %cst_18 [1, 2] : vector<1x1x256xf32> to vector<1xf32>
    %60 = vector.shape_cast %59 : vector<1xf32> to vector<1x1x1xf32>
    %61 = vector.extract %60[0, 0, 0] : f32 from vector<1x1x1xf32>
    %62 = vector.broadcast %61 : f32 to vector<1x1x1x128xf32>
    %63 = arith.addf %57, %62 : vector<1x1x1x128xf32>
    %c0_19 = arith.constant 0 : index
    %c0_20 = arith.constant 0 : index
    %c0_21 = arith.constant 0 : index
    %c0_22 = arith.constant 0 : index
    %64 = vector.load %arg4[%c0_19, %c0_20, %c0_21, %c0_22] : memref<1x1x1x128xf32, #tpu.memory_space<vmem>>, vector<1x1x1x128xf32>
    tpu.vector_store %arg4[%c0_19, %c0_20, %c0_21, %c0_22], %63 {strides = array<i32>} : memref<1x1x1x128xf32, #tpu.memory_space<vmem>>, vector<1x1x1x128xf32>,
    return
  }
  func.func @transform_0(%arg0: i32, %arg1: i32) -> (i32, i32, i32) {
    %c0_i32 = arith.constant 0 : i32
    %c0_i32_0 = arith.constant 0 : i32
    return %arg0, %c0_i32, %arg1 : i32, i32, i32
  }
  func.func @transform_1(%arg0: i32, %arg1: i32) -> (i32, i32, i32) {
    %c0_i32 = arith.constant 0 : i32
    %c0_i32_0 = arith.constant 0 : i32
    return %arg0, %c0_i32, %arg1 : i32, i32, i32
  }
  func.func @transform_2(%arg0: i32, %arg1: i32) -> (i32, i32, i32, i32) {
    %c0_i32 = arith.constant 0 : i32
    %c0_i32_0 = arith.constant 0 : i32
    %c0_i32_1 = arith.constant 0 : i32
    return %arg0, %arg1, %c0_i32, %c0_i32_0 : i32, i32, i32, i32
  }
}

</mosaic_0001>

<bundles_post_ra>
// kernel: tpu_custom_call.1
= control target key start
LH: loop header
LB: loop body
LE: loop exit
PB: predicated region body
PF: predicated region fallthrough
CT: control target
= control target key end

     0   :  { %7 = vsyncpa [#allocation3], 0  ;;  %s924_s0 = inlined_call_operand.hbm [shape: f32[2,4,256], index: 0, kind: input, shape index: {}]   ;;  %s925_s1 = inlined_call_operand.vmem [shape: s8[2,1,256], index: 1, kind: input, shape index: {}]   ;;  %s926_s2 = inlined_call_operand.hbm [shape: f32[2,1,1,128], index: 2, kind: output, shape index: {}]  }
   0x1   :  { %9 = vsyncpa [#allocation3 + $0x1], 0 }
   0x2   :  { %10 = vsyncpa [#allocation4], 0 }
   0x3   :  { %12 = vsyncpa [#allocation4 + $0x1], 0  ;;  %s714_s9 = smov 0   ;;  %s716_s10 = smov 0  }
   0x4   :  { %s718_s11 = smov 0   ;;  %s720_s12 = smov 0  }
   0x5   :  { %s722_s13 = smov 0   ;;  %s724_s14 = smov 0  }
   0x6 LB: > { %s490_s15 = sadd.s32 4294967295, %s694_s14   ;;  %s491_s16 = sadd.s32 4294967294, %s694_s14   ;;  %s694_s14 = sphi %s724_s14, %s18_s14   ;;  %s690_s13 = sphi %s722_s13, %s942_s13   ;;  %s686_s12 = sphi %s720_s12, %s941_s12   ;;  %s682_s11 = sphi %s718_s11, %s940_s11   ;;  %s678_s10 = sphi %s716_s10, %s939_s10   ;;  %s674_s9 = sphi %s714_s9, %s938_s9  }
   0x7   : > { %s30_s17 = sadd.s32 1, %s690_s13  ;;  %s39_s18 = sadd.s32 1, %s682_s11 }
   0x8   : > { %p32_p0 = scmp.ge.s32.totalorder %s30_s17, 2  ;;  %p46_p1 = scmp.ne.s32.totalorder %s682_s11, %s678_s10 }
   0x9   : > { %p47_p2 = scmp.eq.s32.totalorder %s694_s14, 0  ;;  %p52_p3 = scmp.ne.s32.totalorder %s678_s10, %s674_s9 }
   0xa   : > { %s944_s17 = smov (%p32_p0, %s30_s17), 0  ;;  %p53_p5 = scmp.eq.s32.totalorder %s490_s15, 0 }
   0xb   : > { %p755_p4 = por %p47_p2, %p46_p1  ;;  %s34_s20 = ssub.s32 %s690_s13, %s944_s17 }
   0xc   : > { %p106_p6 = scmp.eq.s32.totalorder %s490_s15, 1  ;;  %p37_p7 = scmp.eq.s32.totalorder %s34_s20, 0 }
   0xd   : > { %p761_p8 = por %p53_p5, %p52_p3  ;;  %p112_p10 = scmp.eq.s32.totalorder %s491_s16, 1 }
   0xe   : > { %p765_p9 = por %p106_p6, %p46_p1  ;;  %p520_p13 = scmp.lt.s32.totalorder %s694_s14, 2 }
   0xf   : > { %s770_s23 = scalar_select %p37_p7, %s682_s11, %s39_s18  }
  0x10   : > { %s930_s22 = scalar_select %p765_p9, 1, 0 }
  0x11   : > { %p772_p11 = por %p112_p10, %p52_p3  ;;  %s132_s25 = sand.u32 1, %s682_s11  }
  0x12   : > { %s494_s26 = sshll.u32 %s132_s25, 3  ;;  %s505_s27 = sshll.u32 %s690_s13, 7 }
  0x13   : > { %s931_s24 = scalar_select %p772_p11, 1, 0 }
  0x14   : > { %s783_s30 = scalar_lea.hbm %s924_s0, %s505_s27  ;;  %s136_s3 = scalar_lea.vmem [#allocation2], %s494_s26 }
  0x15   : > { %s146_s4 = sshll.u32 %s136_s3, 4  ;;  %p789_p0 = pnand %p520_p13, %p755_p4  ;;  %s785_s4 = int_to_ptr.vmem [resolvable:$true] %s146_s4 }
  0x16   : > { %s133_s6 = scalar_lea.sflag [#allocation3], %s132_s25  ;;  %s582_s7 = scalar_lea.hbm %s783_s30, 128 }
  0x17   : > { %p583_p3 = scmp.ne.s32.totalorder %s783_s30, %s582_s7  ;;  %p584_p5 = pneg %p789_p0 }
  0x18   : > { %s587_s16 = scalar_lea.hbm %s924_s0, 256  ;;  %p588_p4 = scmp.lt.u32.totalorder %s783_s30, %s924_s0 }
  0x19   : > { %p585_p6 = pnand %p584_p5, %p583_p3  ;;  %p589_p10 = scmp.lt.u32.totalorder %s587_s16, %s582_s7 }
  0x1a   : > { %p591_p12 = scmp.lt.u32.totalorder %s582_s7, %s783_s30 }
  0x1b   : > { %p586_p7 = pneg %p585_p6  ;;  %p590_p13 = por %p589_p10, %p588_p4 }
  0x1d   : > { %p592_p1 = por %p591_p12, %p590_p13 }
  0x1f   : > { %p593_p2 = pnand %p592_p1, %p586_p7 }
  0x21   : > { %596 = shalt.err (!%p593_p2)
}
  0x22   : > { %s597_s20 = scalar_lea.vmem %s785_s4, 128  ;;  %s696_s25 = smov [#allocation2]  }
  0x23   : > { %p598_p3 = scmp.ne.s32.totalorder %s785_s4, %s597_s20  ;;  %s602_s26 = sshll.u32 %s696_s25, 4  ;;  %s603_s26 = int_to_ptr.vmem [resolvable:$false] %s602_s26 }
  0x24   : > { %s604_s27 = scalar_lea.vmem %s603_s26, 256  ;;  %p605_p9 = scmp.lt.s32.totalorder %s785_s4, %s603_s26 }
  0x25   : > { %p600_p6 = pnand %p598_p3, %p584_p5  ;;  %p606_p4 = scmp.lt.s32.totalorder %s604_s27, %s597_s20 }
  0x27   : > { %p601_p11 = pneg %p600_p6  ;;  %p607_p10 = por %p606_p4, %p605_p9 }
  0x29   : > { %p608_p12 = pnand %p607_p10, %p601_p11 }
  0x2b   : > { %611 = shalt.err (!%p608_p12)
}
  0x2c   : > { %515 = dma.hbm_to_vmem [thread:$0]  (!%p789_p0), %s783_s30, 128, %s785_s4, %s133_s6  }
  0x2d   : > { %p933_p1 = scmp.lt.s32.totalorder %s694_s14, 3  ;;  %p934_p2 = scmp.ge.s32.totalorder %s694_s14, 1 }
  0x2f   : > { %p164_p5 = pnand %p934_p2, %p933_p1 }
  0x30   : > { %s825_s28 = sand.u32 (!%p164_p5), 1, %s678_s10  }
  0x31   : > { %167 = sbr.rel (%p164_p5) target bundleno = 357 (0x165), region = 28  ;;  %s498_s29 = sshll.u32 (!%p164_p5), %s825_s28, 3 }
  0x32   : > { %s170_s3 = scalar_lea.sflag (!%p164_p5), [#allocation3], %s825_s28  ;;  %s173_s7 = scalar_lea.vmem (!%p164_p5), [#allocation2], %s498_s29 }
  0x38   : > { %665 = dma.done.wait (%p761_p8), %s170_s3, 128  }
  0x39   : > { %667 = vsyncadd (%p761_p8), %s170_s3, 4294967168  ;;  %p203_p9 = scmp.lt.s32.totalorder %s686_s12, 1  ;;  %vm215_vm0 = vcmask 1043456   ;;  %v211_v0 = vld [vmem:[%s173_s7] sm:$0xff]  ;;  %v260_v3 = vlaneseq  ;;  %v697_v29 = vmov 0.0   ;;  %vm367_vm7 = vcmask 1040384  }
  0x3a   : > { %v213_v1 = vcombine.high %v211_v0, %v211_v0  ;;  %v216_v2 = vsel %vm215_vm0, %v211_v0, -inf  ;;  %s200_s21 = scalar_lea.vmem [#allocation5], %s825_s28  ;;  %s502_s16 = sshll.u32 %s686_s12, 4 }
  0x3b   : > { %s204_s30 = scalar_select %p203_p9, %s686_s12, 1  ;;  %v217_v4 = vrot.slane %v216_v2, 4  ;;  %v840_v8 = vshrl.u32 %v260_v3, 7 }
  0x3c   : > { %v223_v5 = vsel %vm215_vm0, %v213_v1, -inf  ;;  %s397_s15 = sshll.u32 %s200_s21, 4  ;;  %s877_s25 = scalar_lea.hbm %s926_s2, %s502_s16  ;;  %s872_s15 = int_to_ptr.vmem [resolvable:$true] %s397_s15 }
  0x3d   : > { %s499_s4 = sshll.u32 %s204_s30, 1  ;;  %v218_v6 = vmax.f32 %v216_v2, %v217_v4  ;;  %v224_v7 = vrot.slane %v223_v5, 4  ;;  %v843_v14 = vsub.s32 0, %v840_v8  ;;  %v268_v18 = vsub.s32 4, %v840_v8  ;;  %s384_s26 = scalar_lea.sflag [#allocation4], %s825_s28 }
  0x3e   : > { %s209_s8 = scalar_lea.vmem %s925_s1, %s499_s4  ;;  %s612_s27 = scalar_lea.vmem %s872_s15, 16 }
  0x3f   : > { %v219_v9 = vrot.slane %v218_v6, 2  ;;  %v225_v10 = vmax.f32 %v223_v5, %v224_v7  ;;  %v258_v11 = vld [vmem:[%s209_s8] sm:$0x3]  ;;  %p613_p8 = scmp.ne.s32.totalorder %s872_s15, %s612_s27  ;;  %p935_p11 = scmp.ne.s32.totalorder %s930_s22, 0 }
  0x40   : > { %v845_v17 = vunpack.c.0.s8 %v258_v11  ;;  %s698_s12 = smov [#allocation5]  }
  0x41   : > { %v220_v12 = vmax.f32 %v218_v6, %v219_v9  ;;  %v226_v13 = vrot.slane %v225_v10, 2  ;;  %p614_p0 = pnand %p613_p8, %p935_p11  ;;  %s616_s29 = sshll.u32 %s698_s12, 4  ;;  %s617_s29 = int_to_ptr.vmem [resolvable:$false] %s616_s29 }
  0x42   : > { %v265_v22 = vrot.slane %v845_v17, %v843_v14  ;;  %v269_v23 = vrot.slane %v845_v17, %v268_v18  ;;  %vm308_vm3 = vcmp.eq.s32.totalorder %v845_v17, 0  ;;  %vm310_vm4 = vcmp.eq.s32.totalorder %v845_v17, 1  ;;  %s618_s3 = scalar_lea.vmem %s617_s29, 32  ;;  %p619_p13 = scmp.lt.s32.totalorder %s872_s15, %s617_s29 }
  0x43   : > { %v221_v15 = vrot.slane %v220_v12, 1  ;;  %v227_v16 = vmax.f32 %v225_v10, %v226_v13  ;;  %v309_v6 = vsel %vm308_vm3, 0.25, %v697_v29  ;;  %vm312_vm5 = vcmp.eq.s32.totalorder %v845_v17, 2  ;;  %p615_p7 = pneg %p614_p0  ;;  %p620_p3 = scmp.lt.s32.totalorder %s618_s3, %s612_s27 }
  0x44   : > { %v273_v26 = vrot.slane %v265_v22, %v843_v14  ;;  %v277_v27 = vrot.slane %v269_v23, %v843_v14  ;;  %vm314_vm6 = vcmp.eq.s32.totalorder %v845_v17, 3 }
  0x45   : > { %v222_v19 = vmax.f32 %v220_v12, %v221_v15  ;;  %v228_v20 = vrot.slane %v227_v16, 1  ;;  %v311_v12 = vsel %vm310_vm4, 0.75, %v309_v6  ;;  %p621_p6 = por %p620_p3, %p619_p13 }
  0x46   : > { %vm278_vm1 = vcmp.eq.s32.totalorder %v840_v8, %v273_v26  ;;  %vm279_vm2 = vcmp.eq.s32.totalorder %v840_v8, %v277_v27 }
  0x47   : > { %v229_v21 = vmax.f32 %v227_v16, %v228_v20  ;;  %v500_v30 = vsel %vm278_vm1, 1.0, %v697_v29  ;;  %v501_v31 = vsel %vm279_vm2, 1.0, %v697_v29  ;;  %p622_p4 = pnand %p621_p6, %p615_p7 }
  0x48   : > { %v286_v32 = vcombine.low %v500_v30, %v501_v31 }
  0x49   : > { %v232_v24 = vcombine.low %v222_v19, %v229_v21  ;;  %v313_v21 = vsel %vm312_vm5, 0.5, %v311_v12 }
  0x4a   : > { %v315_v31 = vsel %vm314_vm6, 0.5, %v313_v21 }
  0x4b   : > { %v234_v25 = vsub.f32 %v211_v0, %v232_v24 }
  0x4d   : > { %v235_v28 = vmul.f32 1.442695, %v234_v25  ;;  %v288_v33 = vmul.f32 %v286_v32, %v234_v25 }
  0x4f   : > { %572 = vpow2.f32 %v235_v28  ;;  %v290_v38 = vcombine.high %v288_v33, %v288_v33  ;;  %v292_v43 = vsel %vm215_vm0, %v288_v33, 0.0 }
  0x50   : > { %v293_v49 = vrot.slane %v292_v43, 4 }
  0x51   : > { %v299_v48 = vsel %vm215_vm0, %v290_v38, 0.0 }
  0x52   : > { %v300_v54 = vrot.slane %v299_v48, 4  ;;  %v294_v58 = vadd.f32 %v293_v49, %v292_v43 }
  0x54   : > { %v301_v62 = vadd.f32 %v300_v54, %v299_v48  ;;  %v295_v1 = vrot.slane %v294_v58, 2 }
  0x56   : > { %v302_v3 = vrot.slane %v301_v62, 2  ;;  %v296_v5 = vadd.f32 %v295_v1, %v294_v58 }
  0x58   : > { %v303_v9 = vadd.f32 %v302_v3, %v301_v62  ;;  %v297_v11 = vrot.slane %v296_v5, 1 }
  0x59   : > { %v573_v34 = vpop.eup %572 }
  0x5a   : > { %v238_v35 = vcombine.high %v573_v34, %v573_v34  ;;  %v240_v36 = vsel %vm215_vm0, %v573_v34, 0.0  ;;  %v329_v39 = vmul.f32 %v573_v34, %v286_v32  ;;  %v304_v19 = vrot.slane %v303_v9, 1 }
  0x5b   : > { %v241_v37 = vrot.slane %v240_v36, 4  ;;  %v298_v25 = vadd.f32 %v297_v11, %v296_v5 }
  0x5c   : > { %v247_v40 = vsel %vm215_vm0, %v238_v35, 0.0  ;;  %v331_v44 = vcombine.high %v329_v39, %v329_v39  ;;  %v333_v45 = vsel %vm215_vm0, %v329_v39, 0.0  ;;  %v305_v30 = vadd.f32 %v304_v19, %v303_v9 }
  0x5d   : > { %v242_v41 = vadd.f32 %v241_v37, %v240_v36  ;;  %v248_v42 = vrot.slane %v247_v40, 4  ;;  %v334_v53 = vrot.slane %v333_v45, 4  ;;  %v320_v37 = vrot.slane %v315_v31, %v843_v14 }
  0x5e   : > { %v340_v50 = vsel %vm215_vm0, %v331_v44, 0.0 }
  0x5f   : > { %v243_v46 = vrot.slane %v242_v41, 2  ;;  %v249_v47 = vadd.f32 %v248_v42, %v247_v40  ;;  %v341_v57 = vrot.slane %v340_v50, 4  ;;  %v335_v61 = vadd.f32 %v334_v53, %v333_v45 }
  0x60   : > { %v324_v40 = vrot.slane %v315_v31, %v268_v18 }
  0x61   : > { %v244_v51 = vadd.f32 %v243_v46, %v242_v41  ;;  %v250_v52 = vrot.slane %v249_v47, 2  ;;  %v342_v0 = vadd.f32 %v341_v57, %v340_v50  ;;  %v336_v2 = vrot.slane %v335_v61, 2 }
  0x63   : > { %v245_v55 = vrot.slane %v244_v51, 1  ;;  %v251_v56 = vadd.f32 %v250_v52, %v249_v47  ;;  %v343_v4 = vrot.slane %v342_v0, 2  ;;  %v337_v7 = vadd.f32 %v336_v2, %v335_v61 }
  0x65   : > { %v246_v59 = vadd.f32 %v245_v55, %v244_v51  ;;  %v252_v60 = vrot.slane %v251_v56, 1  ;;  %v344_v10 = vadd.f32 %v343_v4, %v342_v0  ;;  %v338_v15 = vrot.slane %v337_v7, 1 }
  0x67   : > { %v253_v63 = vadd.f32 %v252_v60, %v251_v56  ;;  %574 = vlog2.f32 %v246_v59  ;;  %v345_v22 = vrot.slane %v344_v10, 1  ;;  %v339_v27 = vadd.f32 %v338_v15, %v337_v7 }
  0x68   : > { %576 = vrcp.f32 %v246_v59 }
  0x69   : > { %578 = vlog2.f32 %v253_v63  ;;  %v346_v33 = vadd.f32 %v345_v22, %v344_v10 }
  0x6a   : > { %580 = vrcp.f32 %v253_v63 }
  0x71   : > { %v575_v13 = vpop.eup %574 }
  0x72   : > { %v577_v16 = vpop.eup %576  ;;  %v255_v26 = vmul.f32 0.6931472, %v575_v13 }
  0x73   : > { %v579_v20 = vpop.eup %578  ;;  %v349_v23 = vmul.f32 %v577_v16, %v246_v59 }
  0x74   : > { %v581_v24 = vpop.eup %580  ;;  %v257_v32 = vmul.f32 0.6931472, %v579_v20  ;;  %v306_v36 = vsub.f32 %v298_v25, %v255_v26 }
  0x75   : > { %v350_v28 = vmul.f32 %v581_v24, %v253_v63  ;;  %v351_v29 = vsub.f32 2.0, %v349_v23 }
  0x76   : > { %v307_v17 = vsub.f32 %v305_v30, %v257_v32  ;;  %v327_v43 = vmul.f32 %v320_v37, %v306_v36 }
  0x77   : > { %v352_v34 = vsub.f32 2.0, %v350_v28  ;;  %v353_v35 = vmul.f32 %v577_v16, %v351_v29 }
  0x78   : > { %v328_v46 = vmul.f32 %v324_v40, %v307_v17 }
  0x79   : > { %v354_v38 = vmul.f32 %v581_v24, %v352_v34  ;;  %v355_v39 = vmul.f32 %v353_v35, %v339_v27 }
  0x7b   : > { %v356_v41 = vmul.f32 %v354_v38, %v346_v33  ;;  %v357_v42 = vsub.f32 1.0, %v355_v39 }
  0x7d   : > { %v358_v44 = vsub.f32 1.0, %v356_v41  ;;  %v359_v45 = vmax.f32 %v357_v42, 0.0 }
  0x7f   : > { %v360_v47 = vmax.f32 %v358_v44, 0.0  ;;  %v361_v48 = vmul.f32 %v359_v45, %v359_v45 }
  0x81   : > { %v362_v49 = vmul.f32 %v360_v47, %v360_v47  ;;  %v363_v50 = vmul.f32 %v361_v48, %v327_v43 }
  0x83   : > { %v364_v51 = vmul.f32 %v362_v49, %v328_v46  ;;  %v365_v14 = vsub.f32 0.0, %v363_v50 }
  0x85   : > { %v366_v52 = vsub.f32 0.0, %v364_v51  ;;  %v368_v53 = vsel %vm367_vm7, %v365_v14, 0.0 }
  0x87   : > { %v369_v54 = vsel %vm367_vm7, %v366_v52, 0.0 }
  0x88   : > { %v370_v8 = vadd.f32 %v369_v54, %v368_v53 }
  0x8a   : > { %371 = vadd.xlane.f32.xlu0 %v370_v8 }
 0x117   : > { %v372_v18 = vpop.xlane.xlu0 %371 }
 0x118   : > { %v373_v55 = vrot.slane %v372_v18, 4 }
 0x11a   : > { %v374_v56 = vadd.f32 %v373_v55, %v372_v18 }
 0x11c   : > { %v375_v57 = vrot.slane %v374_v56, 2 }
 0x11e   : > { %v376_v58 = vadd.f32 %v375_v57, %v374_v56 }
 0x120   : > { %v377_v59 = vrot.slane %v376_v58, 1 }
 0x122   : > { %v378_v60 = vadd.f32 %v377_v59, %v376_v58 }
 0x124   : > { %506 = vpush %v378_v60 }
 0x155   : > { %s507_s18 = spop %506 }
 0x156   : > { %v380_v61 = vstv %s507_s18 }
 0x157   : > { %382 = vst [vmem:[%s200_s21] sm:$0x1] %v380_v61 }
 0x158   : > { %625 = shalt.err (!%p622_p4)
}
 0x159   : > { %s626_s28 = scalar_lea.hbm %s877_s25, 16  ;;  %s630_s4 = scalar_lea.hbm %s926_s2, 32 }
 0x15a   : > { %p627_p10 = scmp.ne.s32.totalorder %s877_s25, %s626_s28  ;;  %p631_p2 = scmp.lt.u32.totalorder %s877_s25, %s926_s2 }
 0x15b   : > { %p632_p5 = scmp.lt.u32.totalorder %s630_s4, %s626_s28  ;;  %p634_p8 = scmp.lt.u32.totalorder %s626_s28, %s877_s25 }
 0x15c   : > { %p628_p12 = pnand %p627_p10, %p935_p11 }
 0x15d   : > { %p633_p9 = por %p632_p5, %p631_p2 }
 0x15e   : > { %p629_p1 = pneg %p628_p12 }
 0x15f   : > { %p635_p0 = por %p634_p8, %p633_p9 }
 0x161   : > { %p636_p7 = pnand %p635_p0, %p629_p1 }
 0x163   : > { %639 = shalt.err (!%p636_p7)
}
 0x164   : > { %510 = dma.vmem_to_hbm [thread:$0]  (%p935_p11), %s872_s15, 16, %s877_s25, %s384_s26  }
 0x165 PF: > { %s409_s8 = sand.u32 1, %s674_s9   ;;  %p936_p13 = scmp.ne.s32.totalorder %s931_s24, 0 }
 0x166   : > { %p937_p3 = scmp.ge.s32.totalorder %s694_s14, 2  ;;  %s410_s21 = scalar_lea.sflag [#allocation4], %s409_s8 }
 0x168   : > { %p517_p6 = pnand %p937_p3, %p936_p13 }
 0x16a   : > { %669 = dma.done.wait (!%p517_p6), %s410_s21, 16  }
 0x16b   : > { %671 = vsyncadd (!%p517_p6), %s410_s21, 4294967280  ;;  %s18_s14 = sadd.s32 1, %s694_s14   ;;  %s938_s9 = smov %s678_s10 }
 0x16c   : > { %p15_p4 = scmp.ge.s32.totalorder %s18_s14, 4   ;;  %s939_s10 = smov %s682_s11 }
 0x16d   : > { %s940_s11 = smov %s770_s23  ;;  %s941_s12 = smov %s690_s13 }
 0x16e   : > { %s942_s13 = smov %s944_s17  ;;  %17 = sbr.rel (!%p15_p4) target bundleno = 6 (0x6), region = 76 }
 0x175   :  { %414 = vsyncpa [#allocation3], 1 }
 0x176   :  { %416 = vsyncpa [#allocation3 + $0x1], 1 }
 0x177   :  { %417 = vsyncpa [#allocation4], 1 }
 0x178   :  { %419 = vsyncpa [#allocation4 + $0x1], 1 }

</bundles_post_ra>
